<compile_context>
chip_gen: v7x
topology: tpu7x:2x2x1
jax: 0.10.0
libtpu: 0.0.40
codegen_flags: <defaults>
</compile_context>

<pallas_src>
import functools

import jax
import jax.numpy as jnp
from jax import lax
from jax.experimental import pallas as pl
from jax.experimental.pallas import tpu as pltpu


def _round_up(n, m):
    return ((n + m - 1) // m) * m


def _pad_gate_cols(a, h, h_pad):
    """Pad the last axis (..., 4*h) gate-block-wise (i|f|g|o) to (..., 4*h_pad)."""
    lead = a.shape[:-1]
    a4 = a.reshape(*lead, 4, h)
    pad = [(0, 0)] * len(lead) + [(0, 0), (0, h_pad - h)]
    return jnp.pad(a4, pad).reshape(*lead, 4 * h_pad)


def _lstm_kernel(gx_ref, w_hh_ref, w_fc_ref, b_fc_ref, out_ref, h_ref, c_ref,
                 *, chunk_t, batch_pad, hidden_pad, unroll):
    """One grid step = one chunk of `chunk_t` timesteps of the serial recurrence.

    gx_ref   : (Tt*Bp, 4Hp) bf16  precomputed input-gate pre-activations (streamed)
    w_hh_ref : (Hp, 4Hp)    bf16  recurrent weights (resident)
    w_fc_ref : (Hp, Op)     bf16  final FC weights (resident)
    b_fc_ref : (1, Op)      f32
    out_ref  : (Bp, Op)     f32   written on the last grid step only
    h_ref/c_ref : (Bp, Hp)  f32   scratch: recurrent state carried across chunks
    """
    t_blk = pl.program_id(0)
    bp, hp = batch_pad, hidden_pad

    @pl.when(t_blk == 0)
    def _init():
        h_ref[...] = jnp.zeros_like(h_ref)
        c_ref[...] = jnp.zeros_like(c_ref)

    w_hh = w_hh_ref[...]                                   # (Hp, 4Hp) bf16, resident
    # TODO(synk): verify in the bundle dump that Mosaic hoists the MXU RHS push of
    # w_hh out of the step loop; otherwise drive it explicitly with
    # pltpu.matmul_push_rhs once per chunk + matmul_acc_lhs/matmul_pop per step.

    def step(tt, carry):
        h, c = carry
        row = pl.multiple_of(tt * bp, bp)                  # bp is a multiple of 16
        gx = gx_ref[pl.ds(row, bp), :].astype(jnp.float32)
        g = gx + jnp.dot(h.astype(jnp.bfloat16), w_hh,
                         preferred_element_type=jnp.float32)
        i_g = jax.nn.sigmoid(g[:, 0 * hp:1 * hp])
        f_g = jax.nn.sigmoid(g[:, 1 * hp:2 * hp])
        g_g = jnp.tanh(g[:, 2 * hp:3 * hp])
        o_g = jax.nn.sigmoid(g[:, 3 * hp:4 * hp])
        c = f_g * c + i_g * g_g
        h = o_g * jnp.tanh(c)
        return h, c

    h, c = lax.fori_loop(0, chunk_t, step, (h_ref[...], c_ref[...]),
                         unroll=unroll)
    h_ref[...] = h
    c_ref[...] = c

    # Final FC on the last hidden state, lane-dense (Op multiple of 128).
    @pl.when(t_blk == pl.num_programs(0) - 1)
    def _finish():
        out_ref[...] = (jnp.dot(h.astype(jnp.bfloat16), w_fc_ref[...],
                                preferred_element_type=jnp.float32)
                        + b_fc_ref[...])


def lstm_forward(x, params, *, max_chunk=32, vmem_budget_bytes=48 << 20):
    """x: (B, T, I) float32  ->  (B, O) float32 (matches the PyTorch module)."""
    B, T, I = x.shape
    w_ih, w_hh, b_ih, b_hh, w_fc, b_fc = (params[k] for k in
                                          ("w_ih", "w_hh", "b_ih", "b_hh",
                                           "w_fc", "b_fc"))
    H = w_hh.shape[1]
    O = w_fc.shape[0]

    Bp = _round_up(B, 16)         # 16-row sublanes -> any Tt*Bp is bf16-tile aligned
    Hp = _round_up(H, 128)        # lane-aligned gate slices
    Op = _round_up(O, 128)        # lane-dense output store

    # ---- input projection hoisted out of the serial kernel (one MXU-friendly
    # XLA matmul; avoids lane-padding a tiny-I streamed operand in the kernel) ----
    gx = (jnp.einsum('bti,gi->btg', x.astype(jnp.float32),
                     w_ih.astype(jnp.float32))
          + (b_ih + b_hh).astype(jnp.float32))             # (B, T, 4H)
    gx = _pad_gate_cols(gx, H, Hp)                         # (B, T, 4Hp), pad lanes = 0
    gx = jnp.pad(gx, ((0, Bp - B), (0, 0), (0, 0)))        # (Bp, T, 4Hp)
    gx = jnp.transpose(gx, (1, 0, 2))                      # (T, Bp, 4Hp) time-major

    # ---- VMEM-budgeted chunk length (padded in-VMEM tile sizes) ----
    w_hh_bytes = 2 * _round_up(Hp, 16) * 4 * Hp * 2        # double-buffered bf16
    w_fc_bytes = 2 * _round_up(Hp, 16) * Op * 2
    b_fc_bytes = 2 * 8 * Op * 4
    out_bytes = 2 * _round_up(Bp, 8) * Op * 4
    state_bytes = 2 * Bp * Hp * 4                          # h + c scratch
    fixed = w_hh_bytes + w_fc_bytes + b_fc_bytes + out_bytes + state_bytes
    per_t = 2 * Bp * 4 * Hp * 2                            # gx per timestep, 2x buffered
    Tt = int(max(1, min(max_chunk, T,
                        max(vmem_budget_bytes - fixed, per_t) // per_t)))
    n_chunks = pl.cdiv(T, Tt)
    pad_front = n_chunks * Tt - T

    # Zero FRONT padding of time is exact: with h=c=0, an all-zero gx row gives
    # g-gate = tanh(0) = 0, so c and h stay 0 until the first real timestep.
    gx = jnp.pad(gx, ((pad_front, 0), (0, 0), (0, 0)))
    gx = gx.reshape(n_chunks * Tt * Bp, 4 * Hp).astype(jnp.bfloat16)

    # Zero-padding below is load-bearing (keeps padded h/c lanes at exactly 0).
    w_hh_p = _pad_gate_cols(w_hh.T.astype(jnp.float32), H, Hp)
    w_hh_p = jnp.pad(w_hh_p, ((0, Hp - H), (0, 0))).astype(jnp.bfloat16)
    w_fc_p = jnp.pad(w_fc.T.astype(jnp.float32),
                     ((0, Hp - H), (0, Op - O))).astype(jnp.bfloat16)
    b_fc_p = jnp.pad(b_fc.astype(jnp.float32), (0, Op - O)).reshape(1, Op)

    gx_blk_bytes = _round_up(Tt * Bp, 16) * 4 * Hp * 2
    vmem_limit = 2 * gx_blk_bytes + fixed + (8 << 20)      # + headroom

    kernel = functools.partial(_lstm_kernel, chunk_t=Tt, batch_pad=Bp,
                               hidden_pad=Hp, unroll=min(4, Tt))

    out_padded = pl.pallas_call(
        kernel,
        out_shape=jax.ShapeDtypeStruct((Bp, Op), jnp.float32),
        grid_spec=pltpu.PrefetchScalarGridSpec(
            num_scalar_prefetch=0,
            grid=(n_chunks,),
            in_specs=[
                pl.BlockSpec((Tt * Bp, 4 * Hp), lambda t: (t, 0)),  # gx chunk (streamed)
                # TODO(synk): for large H on v7x, single-buffer the resident weights
                # (pipeline_mode=pl.Buffered(1)) to halve their VMEM footprint.
                pl.BlockSpec((Hp, 4 * Hp), lambda t: (0, 0)),       # w_hh (resident)
                pl.BlockSpec((Hp, Op), lambda t: (0, 0)),           # w_fc
                pl.BlockSpec((1, Op), lambda t: (0, 0)),            # b_fc
            ],
            out_specs=pl.BlockSpec((Bp, Op), lambda t: (0, 0)),
            scratch_shapes=[
                pltpu.VMEM((Bp, Hp), jnp.float32),                  # h carry
                pltpu.VMEM((Bp, Hp), jnp.float32),                  # c carry
            ],
        ),
        compiler_params=pltpu.CompilerParams(
            dimension_semantics=("arbitrary",),                     # serial carry over T
            vmem_limit_bytes=int(vmem_limit),
        ),
    )(gx, w_hh_p, w_fc_p, b_fc_p)

    # TODO(synk): for Bp >= 256 on v7x add a leading "parallel" batch-tile grid axis
    # (2 TensorCores); pointless at the toy Bp used here.
    return out_padded[:B, :O]


def init_params(key, input_size, hidden_size, output_size):
    """Deterministic init mirroring PyTorch default U(-1/sqrt(H), 1/sqrt(H))."""
    ks = jax.random.split(key, 6)
    k_lstm = 1.0 / jnp.sqrt(hidden_size)
    k_fc = 1.0 / jnp.sqrt(hidden_size)
    u = lambda k, shape, s: jax.random.uniform(k, shape, jnp.float32, -s, s)
    return {
        "w_ih": u(ks[0], (4 * hidden_size, input_size), k_lstm),
        "w_hh": u(ks[1], (4 * hidden_size, hidden_size), k_lstm),
        "b_ih": u(ks[2], (4 * hidden_size,), k_lstm),
        "b_hh": u(ks[3], (4 * hidden_size,), k_lstm),
        "w_fc": u(ks[4], (output_size, hidden_size), k_fc),
        "b_fc": u(ks[5], (output_size,), k_fc),
    }


def _reference_forward(x, params):
    """Pure-JAX f32 reference with identical semantics (for correctness check)."""
    H = params["w_hh"].shape[1]
    B = x.shape[0]
    w_ih_t = params["w_ih"].T
    w_hh_t = params["w_hh"].T
    b = params["b_ih"] + params["b_hh"]

    def step(carry, x_t):
        h, c = carry
        gates = x_t @ w_ih_t + h @ w_hh_t + b
        i_g = jax.nn.sigmoid(gates[:, 0 * H:1 * H])
        f_g = jax.nn.sigmoid(gates[:, 1 * H:2 * H])
        g_g = jnp.tanh(gates[:, 2 * H:3 * H])
        o_g = jax.nn.sigmoid(gates[:, 3 * H:4 * H])
        c_new = f_g * c + i_g * g_g
        h_new = o_g * jnp.tanh(c_new)
        return (h_new, c_new), None

    h0 = jnp.zeros((B, H), jnp.float32)
    (h_last, _), _ = lax.scan(step, (h0, jnp.zeros_like(h0)),
                              jnp.transpose(x, (1, 0, 2)))
    return h_last @ params["w_fc"].T + params["b_fc"]


if __name__ == "__main__":
    batch, seq, input_size, hidden_size, output_size = 2, 8, 4, 32, 4

    key = jax.random.PRNGKey(0)
    k_x, k_p = jax.random.split(key)
    x = jax.random.normal(k_x, (batch, seq, input_size), jnp.float32)
    params = init_params(k_p, input_size, hidden_size, output_size)

    # max_chunk=3 -> 3 grid steps with a front-padded tail chunk: exercises the
    # streamed-T path, the carried h/c state, AND the cdiv/padding tail handling.
    out = lstm_forward(x, params, max_chunk=3)
    jax.block_until_ready(out)

    ref = _reference_forward(x, params)
    assert out.shape == (batch, output_size)
    # bf16 matmul operands / bf16 streamed gx (f32 accumulation & gate math)
    # -> loosened tolerance vs the pure-f32 reference.
    assert jnp.allclose(out, ref, atol=3e-2, rtol=3e-2)

    print("KERNEL_OK")
</pallas_src>

<mosaic_0001>
module attributes {stable_mosaic.version = 11 : i64} {
  func.func @_lstm_kernel(%arg0: i32, %arg1: memref<48x512xbf16, #tpu.memory_space<vmem>>, %arg2: memref<128x512xbf16, #tpu.memory_space<vmem>>, %arg3: memref<128x128xbf16, #tpu.memory_space<vmem>>, %arg4: memref<1x128xf32, #tpu.memory_space<vmem>>, %arg5: memref<16x128xf32, #tpu.memory_space<vmem>>, %arg6: memref<16x128xf32, #tpu.memory_space<vmem>>, %arg7: memref<16x128xf32, #tpu.memory_space<vmem>>) attributes {dimension_semantics = [#tpu.dimension_semantics<arbitrary>], iteration_bounds = array<i64: 3>, scalar_prefetch = 0 : i64, scratch_operands = 2 : i64, tpu.core_type = #tpu.core_type<tc>, window_params = [{transform_indices = @transform_0, window_bounds = array<i64: 48, 512>}, {pipeline_mode = #tpu.pipeline_mode<synchronous>, transform_indices = @transform_1, window_bounds = array<i64: 128, 512>}, {pipeline_mode = #tpu.pipeline_mode<synchronous>, transform_indices = @transform_2, window_bounds = array<i64: 128, 128>}, {pipeline_mode = #tpu.pipeline_mode<synchronous>, transform_indices = @transform_3, window_bounds = array<i64: 1, 128>}, {pipeline_mode = #tpu.pipeline_mode<synchronous>, transform_indices = @transform_4, window_bounds = array<i64: 16, 128>}]} {
    %c0_i32 = arith.constant 0 : i32
    %0 = arith.cmpi eq, %arg0, %c0_i32 : i32
    %1 = arith.extui %0 : i1 to i32
    %c0_i32_0 = arith.constant 0 : i32
    %2 = arith.cmpi ne, %1, %c0_i32_0 : i32
    scf.if %2 {
      %cst_29 = arith.constant 0.000000e+00 : f32
      %110 = vector.broadcast %cst_29 : f32 to vector<16x128xf32>
      %c0_30 = arith.constant 0 : index
      %c0_31 = arith.constant 0 : index
      %111 = vector.load %arg6[%c0_30, %c0_31] : memref<16x128xf32, #tpu.memory_space<vmem>>, vector<16x128xf32>
      tpu.vector_store %arg6[%c0_30, %c0_31], %110 {strides = array<i32>} : memref<16x128xf32, #tpu.memory_space<vmem>>, vector<16x128xf32>,
      %cst_32 = arith.constant 0.000000e+00 : f32
      %112 = vector.broadcast %cst_32 : f32 to vector<16x128xf32>
      %c0_33 = arith.constant 0 : index
      %c0_34 = arith.constant 0 : index
      %113 = vector.load %arg7[%c0_33, %c0_34] : memref<16x128xf32, #tpu.memory_space<vmem>>, vector<16x128xf32>
      tpu.vector_store %arg7[%c0_33, %c0_34], %112 {strides = array<i32>} : memref<16x128xf32, #tpu.memory_space<vmem>>, vector<16x128xf32>,
    } else {
    }
    %c0 = arith.constant 0 : index
    %c0_1 = arith.constant 0 : index
    %3 = vector.load %arg2[%c0, %c0_1] : memref<128x512xbf16, #tpu.memory_space<vmem>>, vector<128x512xbf16>
    %c0_2 = arith.constant 0 : index
    %c0_3 = arith.constant 0 : index
    %4 = vector.load %arg6[%c0_2, %c0_3] : memref<16x128xf32, #tpu.memory_space<vmem>>, vector<16x128xf32>
    %c0_4 = arith.constant 0 : index
    %c0_5 = arith.constant 0 : index
    %5 = vector.load %arg7[%c0_4, %c0_5] : memref<16x128xf32, #tpu.memory_space<vmem>>, vector<16x128xf32>
    %c0_i32_6 = arith.constant 0 : i32
    %c16_i32 = arith.constant 16 : i32
    %6 = arith.muli %c0_i32_6, %c16_i32 : i32
    %7 = tpu.assume_multiple %6, 16 : i32
    %8 = arith.index_cast %7 : i32 to index
    %c0_7 = arith.constant 0 : index
    %9 = vector.load %arg1[%8, %c0_7] : memref<48x512xbf16, #tpu.memory_space<vmem>>, vector<16x512xbf16>
    %10 = arith.extf %9 : vector<16x512xbf16> to vector<16x512xf32>
    %11 = arith.truncf %4 : vector<16x128xf32> to vector<16x128xbf16>
    %cst = arith.constant dense<0.000000e+00> : vector<16x512xf32>
    %12 = tpu.matmul %11, %3, %cst {dimension_numbers = #tpu.dot_dimension_numbers<[1], [0], [0], [1], [0, 0, 1, 1], [], []>} : vector<16x128xbf16>, vector<128x512xbf16>, vector<16x512xf32> -> vector<16x512xf32>
    %13 = arith.addf %10, %12 : vector<16x512xf32>
    %14 = vector.extract_strided_slice %13 {offsets = [0, 0], sizes = [16, 128], strides = [1, 1]} : vector<16x512xf32> to vector<16x128xf32>
    %15 = arith.negf %14 : vector<16x128xf32>
    %16 = math.exp %15 : vector<16x128xf32>
    %cst_8 = arith.constant 1.000000e+00 : f32
    %17 = vector.broadcast %cst_8 : f32 to vector<16x128xf32>
    %18 = arith.addf %17, %16 : vector<16x128xf32>
    %19 = arith.divf %17, %18 : vector<16x128xf32>
    %20 = vector.extract_strided_slice %13 {offsets = [0, 128], sizes = [16, 128], strides = [1, 1]} : vector<16x512xf32> to vector<16x128xf32>
    %21 = arith.negf %20 : vector<16x128xf32>
    %22 = math.exp %21 : vector<16x128xf32>
    %cst_9 = arith.constant 1.000000e+00 : f32
    %23 = vector.broadcast %cst_9 : f32 to vector<16x128xf32>
    %24 = arith.addf %23, %22 : vector<16x128xf32>
    %25 = arith.divf %23, %24 : vector<16x128xf32>
    %26 = vector.extract_strided_slice %13 {offsets = [0, 256], sizes = [16, 128], strides = [1, 1]} : vector<16x512xf32> to vector<16x128xf32>
    %27 = math.tanh %26 : vector<16x128xf32>
    %28 = vector.extract_strided_slice %13 {offsets = [0, 384], sizes = [16, 128], strides = [1, 1]} : vector<16x512xf32> to vector<16x128xf32>
    %29 = arith.negf %28 : vector<16x128xf32>
    %30 = math.exp %29 : vector<16x128xf32>
    %cst_10 = arith.constant 1.000000e+00 : f32
    %31 = vector.broadcast %cst_10 : f32 to vector<16x128xf32>
    %32 = arith.addf %31, %30 : vector<16x128xf32>
    %33 = arith.divf %31, %32 : vector<16x128xf32>
    %34 = arith.mulf %25, %5 : vector<16x128xf32>
    %35 = arith.mulf %19, %27 : vector<16x128xf32>
    %36 = arith.addf %34, %35 : vector<16x128xf32>
    %37 = math.tanh %36 : vector<16x128xf32>
    %38 = arith.mulf %33, %37 : vector<16x128xf32>
    %c1_i32 = arith.constant 1 : i32
    %c16_i32_11 = arith.constant 16 : i32
    %39 = arith.muli %c1_i32, %c16_i32_11 : i32
    %40 = tpu.assume_multiple %39, 16 : i32
    %41 = arith.index_cast %40 : i32 to index
    %c0_12 = arith.constant 0 : index
    %42 = vector.load %arg1[%41, %c0_12] : memref<48x512xbf16, #tpu.memory_space<vmem>>, vector<16x512xbf16>
    %43 = arith.extf %42 : vector<16x512xbf16> to vector<16x512xf32>
    %44 = arith.truncf %38 : vector<16x128xf32> to vector<16x128xbf16>
    %cst_13 = arith.constant dense<0.000000e+00> : vector<16x512xf32>
    %45 = tpu.matmul %44, %3, %cst_13 {dimension_numbers = #tpu.dot_dimension_numbers<[1], [0], [0], [1], [0, 0, 1, 1], [], []>} : vector<16x128xbf16>, vector<128x512xbf16>, vector<16x512xf32> -> vector<16x512xf32>
    %46 = arith.addf %43, %45 : vector<16x512xf32>
    %47 = vector.extract_strided_slice %46 {offsets = [0, 0], sizes = [16, 128], strides = [1, 1]} : vector<16x512xf32> to vector<16x128xf32>
    %48 = arith.negf %47 : vector<16x128xf32>
    %49 = math.exp %48 : vector<16x128xf32>
    %cst_14 = arith.constant 1.000000e+00 : f32
    %50 = vector.broadcast %cst_14 : f32 to vector<16x128xf32>
    %51 = arith.addf %50, %49 : vector<16x128xf32>
    %52 = arith.divf %50, %51 : vector<16x128xf32>
    %53 = vector.extract_strided_slice %46 {offsets = [0, 128], sizes = [16, 128], strides = [1, 1]} : vector<16x512xf32> to vector<16x128xf32>
    %54 = arith.negf %53 : vector<16x128xf32>
    %55 = math.exp %54 : vector<16x128xf32>
    %cst_15 = arith.constant 1.000000e+00 : f32
    %56 = vector.broadcast %cst_15 : f32 to vector<16x128xf32>
    %57 = arith.addf %56, %55 : vector<16x128xf32>
    %58 = arith.divf %56, %57 : vector<16x128xf32>
    %59 = vector.extract_strided_slice %46 {offsets = [0, 256], sizes = [16, 128], strides = [1, 1]} : vector<16x512xf32> to vector<16x128xf32>
    %60 = math.tanh %59 : vector<16x128xf32>
    %61 = vector.extract_strided_slice %46 {offsets = [0, 384], sizes = [16, 128], strides = [1, 1]} : vector<16x512xf32> to vector<16x128xf32>
    %62 = arith.negf %61 : vector<16x128xf32>
    %63 = math.exp %62 : vector<16x128xf32>
    %cst_16 = arith.constant 1.000000e+00 : f32
    %64 = vector.broadcast %cst_16 : f32 to vector<16x128xf32>
    %65 = arith.addf %64, %63 : vector<16x128xf32>
    %66 = arith.divf %64, %65 : vector<16x128xf32>
    %67 = arith.mulf %58, %36 : vector<16x128xf32>
    %68 = arith.mulf %52, %60 : vector<16x128xf32>
    %69 = arith.addf %67, %68 : vector<16x128xf32>
    %70 = math.tanh %69 : vector<16x128xf32>
    %71 = arith.mulf %66, %70 : vector<16x128xf32>
    %c2_i32 = arith.constant 2 : i32
    %c16_i32_17 = arith.constant 16 : i32
    %72 = arith.muli %c2_i32, %c16_i32_17 : i32
    %73 = tpu.assume_multiple %72, 16 : i32
    %74 = arith.index_cast %73 : i32 to index
    %c0_18 = arith.constant 0 : index
    %75 = vector.load %arg1[%74, %c0_18] : memref<48x512xbf16, #tpu.memory_space<vmem>>, vector<16x512xbf16>
    %76 = arith.extf %75 : vector<16x512xbf16> to vector<16x512xf32>
    %77 = arith.truncf %71 : vector<16x128xf32> to vector<16x128xbf16>
    %cst_19 = arith.constant dense<0.000000e+00> : vector<16x512xf32>
    %78 = tpu.matmul %77, %3, %cst_19 {dimension_numbers = #tpu.dot_dimension_numbers<[1], [0], [0], [1], [0, 0, 1, 1], [], []>} : vector<16x128xbf16>, vector<128x512xbf16>, vector<16x512xf32> -> vector<16x512xf32>
    %79 = arith.addf %76, %78 : vector<16x512xf32>
    %80 = vector.extract_strided_slice %79 {offsets = [0, 0], sizes = [16, 128], strides = [1, 1]} : vector<16x512xf32> to vector<16x128xf32>
    %81 = arith.negf %80 : vector<16x128xf32>
    %82 = math.exp %81 : vector<16x128xf32>
    %cst_20 = arith.constant 1.000000e+00 : f32
    %83 = vector.broadcast %cst_20 : f32 to vector<16x128xf32>
    %84 = arith.addf %83, %82 : vector<16x128xf32>
    %85 = arith.divf %83, %84 : vector<16x128xf32>
    %86 = vector.extract_strided_slice %79 {offsets = [0, 128], sizes = [16, 128], strides = [1, 1]} : vector<16x512xf32> to vector<16x128xf32>
    %87 = arith.negf %86 : vector<16x128xf32>
    %88 = math.exp %87 : vector<16x128xf32>
    %cst_21 = arith.constant 1.000000e+00 : f32
    %89 = vector.broadcast %cst_21 : f32 to vector<16x128xf32>
    %90 = arith.addf %89, %88 : vector<16x128xf32>
    %91 = arith.divf %89, %90 : vector<16x128xf32>
    %92 = vector.extract_strided_slice %79 {offsets = [0, 256], sizes = [16, 128], strides = [1, 1]} : vector<16x512xf32> to vector<16x128xf32>
    %93 = math.tanh %92 : vector<16x128xf32>
    %94 = vector.extract_strided_slice %79 {offsets = [0, 384], sizes = [16, 128], strides = [1, 1]} : vector<16x512xf32> to vector<16x128xf32>
    %95 = arith.negf %94 : vector<16x128xf32>
    %96 = math.exp %95 : vector<16x128xf32>
    %cst_22 = arith.constant 1.000000e+00 : f32
    %97 = vector.broadcast %cst_22 : f32 to vector<16x128xf32>
    %98 = arith.addf %97, %96 : vector<16x128xf32>
    %99 = arith.divf %97, %98 : vector<16x128xf32>
    %100 = arith.mulf %91, %69 : vector<16x128xf32>
    %101 = arith.mulf %85, %93 : vector<16x128xf32>
    %102 = arith.addf %100, %101 : vector<16x128xf32>
    %103 = math.tanh %102 : vector<16x128xf32>
    %104 = arith.mulf %99, %103 : vector<16x128xf32>
    %c3_i32 = arith.constant 3 : i32
    %c0_23 = arith.constant 0 : index
    %c0_24 = arith.constant 0 : index
    %105 = vector.load %arg6[%c0_23, %c0_24] : memref<16x128xf32, #tpu.memory_space<vmem>>, vector<16x128xf32>
    tpu.vector_store %arg6[%c0_23, %c0_24], %104 {strides = array<i32>} : memref<16x128xf32, #tpu.memory_space<vmem>>, vector<16x128xf32>,
    %c0_25 = arith.constant 0 : index
    %c0_26 = arith.constant 0 : index
    %106 = vector.load %arg7[%c0_25, %c0_26] : memref<16x128xf32, #tpu.memory_space<vmem>>, vector<16x128xf32>
    tpu.vector_store %arg7[%c0_25, %c0_26], %102 {strides = array<i32>} : memref<16x128xf32, #tpu.memory_space<vmem>>, vector<16x128xf32>,
    %c2_i32_27 = arith.constant 2 : i32
    %107 = arith.cmpi eq, %arg0, %c2_i32_27 : i32
    %108 = arith.extui %107 : i1 to i32
    %c0_i32_28 = arith.constant 0 : i32
    %109 = arith.cmpi ne, %108, %c0_i32_28 : i32
    scf.if %109 {
      %110 = arith.truncf %104 : vector<16x128xf32> to vector<16x128xbf16>
      %c0_29 = arith.constant 0 : index
      %c0_30 = arith.constant 0 : index
      %111 = vector.load %arg3[%c0_29, %c0_30] : memref<128x128xbf16, #tpu.memory_space<vmem>>, vector<128x128xbf16>
      %cst_31 = arith.constant dense<0.000000e+00> : vector<16x128xf32>
      %112 = tpu.matmul %110, %111, %cst_31 {dimension_numbers = #tpu.dot_dimension_numbers<[1], [0], [0], [1], [0, 0, 1, 1], [], []>} : vector<16x128xbf16>, vector<128x128xbf16>, vector<16x128xf32> -> vector<16x128xf32>
      %c0_32 = arith.constant 0 : index
      %c0_33 = arith.constant 0 : index
      %113 = vector.load %arg4[%c0_32, %c0_33] : memref<1x128xf32, #tpu.memory_space<vmem>>, vector<1x128xf32>
      %114 = vector.broadcast %113 : vector<1x128xf32> to vector<16x128xf32>
      %115 = arith.addf %112, %114 : vector<16x128xf32>
      %c0_34 = arith.constant 0 : index
      %c0_35 = arith.constant 0 : index
      %116 = vector.load %arg5[%c0_34, %c0_35] : memref<16x128xf32, #tpu.memory_space<vmem>>, vector<16x128xf32>
      tpu.vector_store %arg5[%c0_34, %c0_35], %115 {strides = array<i32>} : memref<16x128xf32, #tpu.memory_space<vmem>>, vector<16x128xf32>,
    } else {
    }
    return
  }
  func.func @transform_0(%arg0: i32) -> (i32, i32) {
    %c0_i32 = arith.constant 0 : i32
    %c0_i32_0 = arith.constant 0 : i32
    return %arg0, %c0_i32 : i32, i32
  }
  func.func @transform_1(%arg0: i32) -> (i32, i32) {
    %c0_i32 = arith.constant 0 : i32
    %c0_i32_0 = arith.constant 0 : i32
    %c0_i32_1 = arith.constant 0 : i32
    return %c0_i32, %c0_i32_0 : i32, i32
  }
  func.func @transform_2(%arg0: i32) -> (i32, i32) {
    %c0_i32 = arith.constant 0 : i32
    %c0_i32_0 = arith.constant 0 : i32
    %c0_i32_1 = arith.constant 0 : i32
    return %c0_i32, %c0_i32_0 : i32, i32
  }
  func.func @transform_3(%arg0: i32) -> (i32, i32) {
    %c0_i32 = arith.constant 0 : i32
    %c0_i32_0 = arith.constant 0 : i32
    %c0_i32_1 = arith.constant 0 : i32
    return %c0_i32, %c0_i32_0 : i32, i32
  }
  func.func @transform_4(%arg0: i32) -> (i32, i32) {
    %c0_i32 = arith.constant 0 : i32
    %c0_i32_0 = arith.constant 0 : i32
    %c0_i32_1 = arith.constant 0 : i32
    return %c0_i32, %c0_i32_0 : i32, i32
  }
}

</mosaic_0001>

<bundles_post_ra>
// kernel: tpu_custom_call.1
= control target key start
LH: loop header
LB: loop body
LE: loop exit
PB: predicated region body
PF: predicated region fallthrough
CT: control target
= control target key end

     0   :  { %9 = vsyncpa [#allocation5], 0  ;;  %s2060_s0 = inlined_call_operand.hbm [shape: bf16[144,512], index: 0, kind: input, shape index: {}]   ;;  %s2061_s1 = inlined_call_operand.hbm [shape: bf16[128,512], index: 1, kind: input, shape index: {}]   ;;  %s2062_s2 = inlined_call_operand.hbm [shape: bf16[128,128], index: 2, kind: input, shape index: {}]   ;;  %s2063_s3 = inlined_call_operand.vmem [shape: f32[1,128], index: 3, kind: input, shape index: {}]   ;;  %s2064_s4 = inlined_call_operand.hbm [shape: f32[16,128], index: 4, kind: output, shape index: {}]  }
   0x1   :  { %11 = vsyncpa [#allocation5 + $0x1], 0 }
   0x2   :  { %12 = vsyncpa [#allocation8], 0 }
   0x3   :  { %13 = vsyncpa [#allocation6], 0  ;;  %s1658_s15 = smov 0   ;;  %s1660_s16 = smov 0  }
   0x4   :  { %s1662_s17 = smov 0   ;;  %s1664_s18 = smov 0  }
   0x5 LB: > { %s1677_s19 = sadd.s32 4294967295, %s1617_s18   ;;  %p39_p0 = scmp.ne.s32.totalorder %s1609_s16, %s1605_s15  ;;  %s1617_s18 = sphi %s1664_s18, %s2080_s18   ;;  %s1613_s17 = sphi %s1662_s17, %s2079_s17   ;;  %s1609_s16 = sphi %s1660_s16, %s2078_s16   ;;  %s1605_s15 = sphi %s1658_s15, %s2077_s15  }
   0x6   : > { %p2065_p1 = scmp.eq.s32.totalorder %s1677_s19, 0  ;;  %p1118_p2 = scmp.ge.s32.totalorder %s1617_s18, 1 }
   0x7   : > { %p134_p3 = scmp.lt.s32.totalorder %s1617_s18, 4  ;;  %s1619_s22 = smov [#allocation7]  }
   0x8   : > { %p1686_p5 = por %p2065_p1, %p39_p0  ;;  %s146_s23 = sshll.u32 %s1619_s22, 4  ;;  %s147_s23 = int_to_ptr.vmem [resolvable:$true] %s146_s23 }
   0x9   : > { %p1690_p6 = pnand %p1118_p2, %p134_p3  ;;  %s1620_s25 = smov [#allocation9]  }
   0xa   : > { %s2068_s20 = scalar_select %p1686_p5, 1, 0 }
   0xb   : > { %s2069_s21 = scalar_select %p1690_p6, 1, 0 }
   0xc   : > { %p1248_p7 = pneg %p1690_p6  ;;  %s159_s26 = sshll.u32 %s1620_s25, 4  ;;  %s1702_s26 = int_to_ptr.vmem [resolvable:$true] %s159_s26 }
   0xd   : > { %s1463_s29 = scalar_lea.hbm %s2061_s1, 4096 }
   0xe   : > { %p1698_p8 = pnand %p1248_p7, %p2065_p1  ;;  %p1464_p9 = scmp.ne.s32.totalorder %s2061_s1, %s1463_s29 }
   0xf   : > { %p1470_p13 = scmp.lt.u32.totalorder %s1463_s29, %s2061_s1 }
  0x10   : > { %p1465_p10 = pneg %p1698_p8 }
  0x12   : > { %p1466_p11 = pnand %p1465_p10, %p1464_p9 }
  0x14   : > { %p1467_p12 = pneg %p1466_p11 }
  0x16   : > { %p1472_p0 = pnand %p1470_p13, %p1467_p12 }
  0x18   : > { %1475 = shalt.err (!%p1472_p0)
}
  0x19   : > { %s1476_s8 = scalar_lea.vmem %s147_s23, 4096  ;;  %p1484_p4 = scmp.lt.s32.totalorder %s147_s23, %s147_s23 }
  0x1a   : > { %p1477_p2 = scmp.ne.s32.totalorder %s147_s23, %s1476_s8  ;;  %p1485_p1 = scmp.lt.s32.totalorder %s1476_s8, %s1476_s8 }
  0x1c   : > { %p1479_p3 = pnand %p1477_p2, %p1465_p10  ;;  %p1486_p5 = por %p1485_p1, %p1484_p4 }
  0x1e   : > { %p1480_p7 = pneg %p1479_p3 }
  0x20   : > { %p1487_p6 = pnand %p1486_p5, %p1480_p7 }
  0x22   : > { %1490 = shalt.err (!%p1487_p6)
}
  0x23   : > { %s1621_s9 = smov 256   ;;  %s1622_s10 = smov 16  }
  0x24   : > { %1251 = dma.hbm_to_vmem [thread:$0]  (!%p1698_p8), %s2061_s1, 4096, %s147_s23, [#allocation8], %s1621_s9, %s1621_s9, %s1622_s10  }
  0x25   : > { %s1491_s15 = scalar_lea.hbm %s2062_s2, 1024 }
  0x26   : > { %p1492_p1 = scmp.ne.s32.totalorder %s2062_s2, %s1491_s15  ;;  %p1498_p6 = scmp.lt.u32.totalorder %s1491_s15, %s2062_s2 }
  0x28   : > { %p1494_p4 = pnand %p1492_p1, %p1465_p10 }
  0x2a   : > { %p1495_p5 = pneg %p1494_p4 }
  0x2c   : > { %p1500_p9 = pnand %p1498_p6, %p1495_p5 }
  0x2e   : > { %1503 = shalt.err (!%p1500_p9)
}
  0x2f   : > { %s1504_s23 = scalar_lea.vmem %s1702_s26, 1024  ;;  %p1512_p0 = scmp.lt.s32.totalorder %s1702_s26, %s1702_s26 }
  0x30   : > { %p1505_p11 = scmp.ne.s32.totalorder %s1702_s26, %s1504_s23  ;;  %p1513_p2 = scmp.lt.s32.totalorder %s1504_s23, %s1504_s23 }
  0x32   : > { %p1507_p12 = pnand %p1505_p11, %p1465_p10  ;;  %p1514_p3 = por %p1513_p2, %p1512_p0 }
  0x34   : > { %p1508_p13 = pneg %p1507_p12 }
  0x36   : > { %p1515_p7 = pnand %p1514_p3, %p1508_p13 }
  0x38   : > { %1518 = shalt.err (!%p1515_p7)
}
  0x39   : > { %s1623_s29 = smov 64   ;;  %s1624_s30 = smov 4  }
  0x3a   : > { %1254 = dma.hbm_to_vmem [thread:$0]  (!%p1698_p8), %s2062_s2, 1024, %s1702_s26, [#allocation8], %s1623_s29, %s1623_s29, %s1624_s30  }
  0x3b   : > { %s1755_s7 = sadd.s32 1, %s1617_s18   ;;  %s26_s11 = sadd.s32 1, %s1613_s17 }
  0x3c   : > { %s23_s8 = ssub.s32 %s1617_s18, %s1755_s7  ;;  %p33_p1 = scmp.ne.s32.totalorder %s1613_s17, %s1609_s16 }
  0x3d   : > { %p24_p10 = scmp.eq.s32.totalorder %s23_s8, 0  ;;  %p34_p4 = scmp.eq.s32.totalorder %s1617_s18, 0 }
  0x3e   : > { %p1261_p6 = scmp.lt.s32.totalorder %s1617_s18, 3  ;;  %s176_s13 = sand.u32 1, %s1613_s17  }
  0x3f   : > { %s1764_s12 = scalar_select %p24_p10, %s1613_s17, %s26_s11  }
  0x40   : > { %p35_p5 = por %p34_p4, %p33_p1  ;;  %s1202_s14 = smul.u32 1536, %s1617_s18 }
  0x41   : > { %s1232_s15 = smul.u32 96, %s176_s13  ;;  %s1780_s18 = scalar_lea.sflag [#allocation5], %s176_s13 }
  0x42   : > { %p1769_p9 = pnand %p1261_p6, %p35_p5  ;;  %s1776_s25 = scalar_lea.hbm %s2060_s0, %s1202_s14 }
  0x43   : > { %s180_s27 = scalar_lea.vmem [#allocation4], %s1232_s15  ;;  %s1519_s23 = scalar_lea.hbm %s1776_s25, 1536 }
  0x44   : > { %s188_s28 = sshll.u32 %s180_s27, 4  ;;  %p1520_p8 = scmp.ne.s32.totalorder %s1776_s25, %s1519_s23  ;;  %s1778_s28 = int_to_ptr.vmem [resolvable:$true] %s188_s28 }
  0x45   : > { %p1521_p11 = pneg %p1769_p9  ;;  %s1524_s5 = scalar_lea.hbm %s2060_s0, 4608 }
  0x46   : > { %p1525_p0 = scmp.lt.u32.totalorder %s1776_s25, %s2060_s0  ;;  %p1526_p2 = scmp.lt.u32.totalorder %s1524_s5, %s1519_s23 }
  0x47   : > { %p1522_p12 = pnand %p1521_p11, %p1520_p8  ;;  %p1528_p7 = scmp.lt.u32.totalorder %s1519_s23, %s1776_s25 }
  0x48   : > { %p1527_p3 = por %p1526_p2, %p1525_p0 }
  0x49   : > { %p1523_p13 = pneg %p1522_p12 }
  0x4a   : > { %p1529_p10 = por %p1528_p7, %p1527_p3 }
  0x4c   : > { %p1530_p1 = pnand %p1529_p10, %p1523_p13 }
  0x4e   : > { %1533 = shalt.err (!%p1530_p1)
}
  0x4f   : > { %s1534_s11 = scalar_lea.vmem %s1778_s28, 1536  ;;  %s1625_s13 = smov [#allocation4]  }
  0x50   : > { %p1535_p4 = scmp.ne.s32.totalorder %s1778_s28, %s1534_s11  ;;  %s1539_s14 = sshll.u32 %s1625_s13, 4  ;;  %s1540_s14 = int_to_ptr.vmem [resolvable:$false] %s1539_s14 }
  0x51   : > { %s1541_s15 = scalar_lea.vmem %s1540_s14, 3072  ;;  %p1542_p8 = scmp.lt.s32.totalorder %s1778_s28, %s1540_s14 }
  0x52   : > { %p1537_p5 = pnand %p1535_p4, %p1521_p11  ;;  %p1543_p12 = scmp.lt.s32.totalorder %s1541_s15, %s1534_s11 }
  0x54   : > { %p1538_p6 = pneg %p1537_p5  ;;  %p1544_p0 = por %p1543_p12, %p1542_p8 }
  0x56   : > { %p1545_p2 = pnand %p1544_p0, %p1538_p6 }
  0x58   : > { %1548 = shalt.err (!%p1545_p2)
}
  0x59   : > { %1258 = dma.hbm_to_vmem [thread:$0]  (!%p1769_p9), %s1776_s25, 1536, %s1778_s28, %s1780_s18, %s1621_s9, %s1621_s9, %s1622_s10  }
  0x5a   : > { %p2072_p11 = scmp.ne.s32.totalorder %s2069_s21, 0 }
  0x5b   : > { %s202_s26 = sand.u32 (!%p2072_p11), 1, %s1609_s16   ;;  %p2073_p13 = scmp.ne.s32.totalorder (!%p2072_p11), %s2068_s20, 0 }
  0x5c   : > { %200 = sbr.rel (%p2072_p11) target bundleno = 1186 (0x4a2), region = 36  ;;  %s203_s27 = scalar_lea.sflag (!%p2072_p11), [#allocation5], %s202_s26 }
  0x5d   : > { %s1233_s22 = smul.u32 (!%p2072_p11), 96, %s202_s26 }
  0x5f   : > { %s1814_s23 = scalar_lea.vmem (!%p2072_p11), [#allocation4], %s1233_s22 }
  0x63   : > { %1592 = dma.done.wait (%p2073_p13), %s203_s27, 1536  }
  0x64   : > { %1594 = vsyncadd (%p2073_p13), %s203_s27, 4294965760  ;;  %p2074_p3 = scmp.eq.s32.totalorder %s1677_s19, 0 }
  0x66   : > { %1596 = dma.done.wait (%p2074_p3), [#allocation8], 5120   ;;  %p2075_p9 = pmov %p2074_p3 }
  0x67   : > { %p2076_p7 = scmp.ne.s32.totalorder %s1677_s19, 0 }
  0x68   : > { %1598 = vsyncadd (%p2075_p9), [#allocation8], 4294962176  ;;  %v1626_v0 = vmov (!%p2076_p7), 0.0  }
  0x69   : > { %239 = sbr.rel (%p2076_p7) target bundleno = 112 (0x70), region = 52  ;;  %240 = vst [vmem:[#allocation2] sm:$0xff] (!%p2076_p7), %v1626_v0  ;;  %241 = vst [vmem:[#allocation2 + $0x8] sm:$0xff] (!%p2076_p7), %v1626_v0 }
  0x6a   : > { %242 = vst [vmem:[#allocation3] sm:$0xff] (!%p2076_p7), %v1626_v0  ;;  %243 = vst [vmem:[#allocation3 + $0x8] sm:$0xff] (!%p2076_p7), %v1626_v0 }
  0x70 PF: > { %v1826_v1 = vld [vmem:[#allocation7 + $0x4] ss:$16 sps:$4 sm:$0xff]   ;;  %v1828_v2 = vld [vmem:[#allocation7] ss:$16 sps:$4 sm:$0xff]   ;;  %v1627_v3 = vmov 0   ;;  %v277_v32 = vld [vmem:[#allocation2 + $0x8] sm:$0xff] }
  0x71   : > { %488 = vmatprep.mubr.bf16.mxu0 %v1627_v3  ;;  %531 = vmatprep.mubr.bf16.mxu1 %v1627_v3  ;;  %v1833_v4 = vld [vmem:[#allocation7 + $0x24] ss:$16 sps:$4 sm:$0xff]   ;;  %v1836_v5 = vld [vmem:[#allocation7 + $0x20] ss:$16 sps:$4 sm:$0xff]   ;;  %v1841_v7 = vld [vmem:[#allocation7 + $0xc] ss:$16 sps:$4 sm:$0xff]  }
  0x72   : > { %456 = vmatprep.subr.bf16.mxu0 %v1826_v1  ;;  %v1839_v6 = vld [vmem:[#allocation7 + $0x44] ss:$16 sps:$4 sm:$0xff]   ;;  %v1843_v8 = vld [vmem:[#allocation7 + $0x8] ss:$16 sps:$4 sm:$0xff]   ;;  %v1846_v9 = vld [vmem:[#allocation7 + $0x40] ss:$16 sps:$4 sm:$0xff]   ;;  %499 = vmatprep.subr.bf16.mxu1 %v1841_v7 }
  0x73   : > { %457 = vmatpush1.bf16.msra.mxu0 %v1828_v2  ;;  %v1850_v10 = vld [vmem:[#allocation7 + $0x64] ss:$16 sps:$4 sm:$0xff]   ;;  %500 = vmatpush1.bf16.msra.mxu1 %v1843_v8  ;;  %v1853_v11 = vld [vmem:[#allocation7 + $0x2c] ss:$16 sps:$4 sm:$0xff]   ;;  %v1855_v12 = vld [vmem:[#allocation7 + $0x28] ss:$16 sps:$4 sm:$0xff]  }
  0x74   : > { %458 = vmatprep.subr.bf16.mxu0 %v1833_v4  ;;  %501 = vmatprep.subr.bf16.mxu1 %v1853_v11  ;;  %v1859_v13 = vld [vmem:[#allocation7 + $0x60] ss:$16 sps:$4 sm:$0xff]   ;;  %v1861_v14 = vld [vmem:[#allocation7 + $0x84] ss:$16 sps:$4 sm:$0xff]   ;;  %v1863_v15 = vld [vmem:[#allocation7 + $0x4c] ss:$16 sps:$4 sm:$0xff]  }
  0x75   : > { %v1867_v16 = vld [vmem:[#allocation7 + $0x48] ss:$16 sps:$4 sm:$0xff]   ;;  %v1870_v17 = vld [vmem:[#allocation7 + $0x6c] ss:$16 sps:$4 sm:$0xff]   ;;  %v1873_v18 = vld [vmem:[#allocation7 + $0x80] ss:$16 sps:$4 sm:$0xff]  }
  0x76   : > { %v1876_v19 = vld [vmem:[#allocation7 + $0xa4] ss:$16 sps:$4 sm:$0xff]   ;;  %v1879_v20 = vld [vmem:[#allocation7 + $0x68] ss:$16 sps:$4 sm:$0xff]   ;;  %v1882_v21 = vld [vmem:[#allocation7 + $0x8c] ss:$16 sps:$4 sm:$0xff]  }
  0x77   : > { %459 = vmatpush1.bf16.msra.mxu0 %v1836_v5  ;;  %502 = vmatpush1.bf16.msra.mxu1 %v1855_v12  ;;  %v1885_v22 = vld [vmem:[#allocation7 + $0xa0] ss:$16 sps:$4 sm:$0xff]   ;;  %v1888_v23 = vld [vmem:[#allocation7 + $0xc4] ss:$16 sps:$4 sm:$0xff]   ;;  %v1891_v24 = vld [vmem:[#allocation7 + $0x88] ss:$16 sps:$4 sm:$0xff]  }
  0x78   : > { %460 = vmatprep.subr.bf16.mxu0 %v1839_v6  ;;  %503 = vmatprep.subr.bf16.mxu1 %v1863_v15  ;;  %v1894_v25 = vld [vmem:[#allocation7 + $0xac] ss:$16 sps:$4 sm:$0xff]   ;;  %v1897_v26 = vld [vmem:[#allocation7 + $0xc0] ss:$16 sps:$4 sm:$0xff]   ;;  %v1900_v27 = vld [vmem:[#allocation7 + $0xe4] ss:$16 sps:$4 sm:$0xff]  }
  0x79   : > { %v1903_v28 = vld [vmem:[#allocation7 + $0xa8] ss:$16 sps:$4 sm:$0xff]   ;;  %v1906_v29 = vld [vmem:[#allocation7 + $0xcc] ss:$16 sps:$4 sm:$0xff]   ;;  %v1909_v30 = vld [vmem:[#allocation7 + $0xe0] ss:$16 sps:$4 sm:$0xff]  }
  0x7a   : > { %v276_v31 = vld [vmem:[#allocation2] sm:$0xff]  ;;  %v1913_v33 = vld [vmem:[#allocation7 + $0xc8] ss:$16 sps:$4 sm:$0xff]   ;;  %v1916_v34 = vld [vmem:[#allocation7 + $0xec] ss:$16 sps:$4 sm:$0xff]   ;;  %p1186_p10 = scmp.ne.s32.totalorder %s1677_s19, 2 }
  0x7b   : > { %461 = vmatpush1.bf16.msra.mxu0 %v1846_v9  ;;  %504 = vmatpush1.bf16.msra.mxu1 %v1867_v16  ;;  %v295_v35 = vpack.c.bf16 %v277_v32, %v276_v31  ;;  %v1920_v36 = vld [vmem:[#allocation7 + $0xe8] ss:$16 sps:$4 sm:$0xff]   ;;  %v283_v37 = vld [vmem:[%s1814_s23] sm:$0xff]  ;;  %v285_v38 = vld [vmem:[%s1814_s23 + $0x10] sm:$0xff]  ;;  %vm1629_vm0 = vmmov (!%p1186_p10), 0  }
  0x7c   : > { %462 = vmatprep.subr.bf16.mxu0 %v1850_v10  ;;  %505 = vmatprep.subr.bf16.mxu1 %v1870_v17  ;;  %v287_v39 = vunpack.c.l.bf16 %v283_v37  ;;  %v288_v40 = vunpack.c.h.bf16 %v283_v37  ;;  %v291_v41 = vunpack.c.l.bf16 %v285_v38  ;;  %v292_v43 = vunpack.c.h.bf16 %v285_v38  ;;  %v284_v46 = vld [vmem:[%s1814_s23 + $0x8] sm:$0xff]  ;;  %v286_v49 = vld [vmem:[%s1814_s23 + $0x18] sm:$0xff] }
  0x7d   : > { %v290_v55 = vunpack.c.h.bf16 %v284_v46  ;;  %v294_v58 = vunpack.c.h.bf16 %v286_v49  ;;  %v289_v60 = vunpack.c.l.bf16 %v284_v46  ;;  %v293_v62 = vunpack.c.l.bf16 %v286_v49 }
  0x7f   : > { %463 = vmatpush1.bf16.msra.mxu0 %v1859_v13  ;;  %506 = vmatpush1.bf16.msra.mxu1 %v1879_v20 }
  0x80   : > { %464 = vmatprep.subr.bf16.mxu0 %v1861_v14  ;;  %507 = vmatprep.subr.bf16.mxu1 %v1882_v21 }
  0x83   : > { %465 = vmatpush1.bf16.msra.mxu0 %v1873_v18  ;;  %508 = vmatpush1.bf16.msra.mxu1 %v1891_v24 }
  0x84   : > { %466 = vmatprep.subr.bf16.mxu0 %v1876_v19  ;;  %509 = vmatprep.subr.bf16.mxu1 %v1894_v25 }
  0x87   : > { %467 = vmatpush1.bf16.msra.mxu0 %v1885_v22  ;;  %510 = vmatpush1.bf16.msra.mxu1 %v1903_v28 }
  0x88   : > { %468 = vmatprep.subr.bf16.mxu0 %v1888_v23  ;;  %511 = vmatprep.subr.bf16.mxu1 %v1906_v29 }
  0x8b   : > { %469 = vmatpush1.bf16.msra.mxu0 %v1897_v26  ;;  %512 = vmatpush1.bf16.msra.mxu1 %v1913_v33 }
  0x8c   : > { %470 = vmatprep.subr.bf16.mxu0 %v1900_v27  ;;  %513 = vmatprep.subr.bf16.mxu1 %v1916_v34 }
  0x8f   : > { %471 = vmatpush1.bf16.msra.mxu0 %v1909_v30  ;;  %514 = vmatpush1.bf16.msra.mxu1 %v1920_v36 }
  0x90   : > { %614 = vmatprep.subr.bf16.mxu0 %v1826_v1  ;;  %657 = vmatprep.subr.bf16.mxu1 %v1841_v7 }
  0x92   : > { %489 = vmatmul.mubr.bf16.vlgmr.msra.gmra.mrb[0].mxu0 %v295_v35  ;;  %532 = vmatmul.mubr.bf16.vlgmr.msra.gmra.mrb[0].mxu1 %v295_v35 }
  0x93   : > { %615 = vmatpush1.bf16.msra.mxu0 %v1828_v2  ;;  %646 = vmatprep.mubr.bf16.mxu0 %v1627_v3 }
  0x94   : > { %616 = vmatprep.subr.bf16.mxu0 %v1833_v4  ;;  %658 = vmatpush1.bf16.msra.mxu1 %v1843_v8 }
  0x95   : > { %659 = vmatprep.subr.bf16.mxu1 %v1853_v11  ;;  %689 = vmatprep.mubr.bf16.mxu1 %v1627_v3 }
  0x97   : > { %617 = vmatpush1.bf16.msra.mxu0 %v1836_v5 }
  0x98   : > { %618 = vmatprep.subr.bf16.mxu0 %v1839_v6  ;;  %660 = vmatpush1.bf16.msra.mxu1 %v1855_v12 }
  0x99   : > { %661 = vmatprep.subr.bf16.mxu1 %v1863_v15 }
  0x9b   : > { %619 = vmatpush1.bf16.msra.mxu0 %v1846_v9 }
  0x9c   : > { %620 = vmatprep.subr.bf16.mxu0 %v1850_v10  ;;  %662 = vmatpush1.bf16.msra.mxu1 %v1867_v16 }
  0x9d   : > { %663 = vmatprep.subr.bf16.mxu1 %v1870_v17 }
  0x9f   : > { %621 = vmatpush1.bf16.msra.mxu0 %v1859_v13 }
  0xa0   : > { %622 = vmatprep.subr.bf16.mxu0 %v1861_v14  ;;  %664 = vmatpush1.bf16.msra.mxu1 %v1879_v20 }
  0xa1   : > { %665 = vmatprep.subr.bf16.mxu1 %v1882_v21 }
  0xa3   : > { %623 = vmatpush1.bf16.msra.mxu0 %v1873_v18 }
  0xa4   : > { %624 = vmatprep.subr.bf16.mxu0 %v1876_v19  ;;  %666 = vmatpush1.bf16.msra.mxu1 %v1891_v24 }
  0xa5   : > { %667 = vmatprep.subr.bf16.mxu1 %v1894_v25 }
  0xa7   : > { %625 = vmatpush1.bf16.msra.mxu0 %v1885_v22 }
  0xa8   : > { %626 = vmatprep.subr.bf16.mxu0 %v1888_v23  ;;  %668 = vmatpush1.bf16.msra.mxu1 %v1903_v28 }
  0xa9   : > { %669 = vmatprep.subr.bf16.mxu1 %v1906_v29 }
  0xab   : > { %627 = vmatpush1.bf16.msra.mxu0 %v1897_v26 }
  0xac   : > { %628 = vmatprep.subr.bf16.mxu0 %v1900_v27  ;;  %670 = vmatpush1.bf16.msra.mxu1 %v1913_v33 }
  0xad   : > { %671 = vmatprep.subr.bf16.mxu1 %v1916_v34 }
  0xaf   : > { %629 = vmatpush1.bf16.msra.mxu0 %v1909_v30 }
  0xb0   : > { %772 = vmatprep.subr.bf16.mxu0 %v1826_v1  ;;  %672 = vmatpush1.bf16.msra.mxu1 %v1920_v36 }
  0xb1   : > { %815 = vmatprep.subr.bf16.mxu1 %v1841_v7 }
 0x165   : > { %v490_v42 = vpop.f32.mrb[0].mxu0  ;;  %v533_v57 = vpop.f32.mrb[0].mxu1 }
 0x166   : > { %v542_v44 = vadd.f32 %v490_v42, %v287_v39  ;;  %v492_v45 = vpop.f32.mrb[1].mxu0  ;;  %v535_v61 = vpop.f32.mrb[1].mxu1  ;;  %v544_v31 = vadd.f32 %v533_v57, %v289_v60 }
 0x167   : > { %v543_v47 = vadd.f32 %v492_v45, %v288_v40  ;;  %v494_v48 = vpop.f32.mrb[2].mxu0  ;;  %v537_v63 = vpop.f32.mrb[2].mxu1  ;;  %v545_v0 = vadd.f32 %v535_v61, %v290_v55 }
 0x168   : > { %v1160_v50 = vmul.f32 -1.442695, %v542_v44  ;;  %v546_v51 = vadd.f32 %v494_v48, %v291_v41  ;;  %v496_v52 = vpop.f32.mrb[3].mxu0  ;;  %v539_v1 = vpop.f32.mrb[3].mxu1  ;;  %v548_v32 = vadd.f32 %v537_v63, %v293_v62 }
 0x169   : > { %v1162_v53 = vmul.f32 -1.442695, %v543_v47  ;;  %v547_v54 = vadd.f32 %v496_v52, %v292_v43  ;;  %v549_v7 = vadd.f32 %v539_v1, %v294_v58  ;;  %v1164_v35 = vmul.f32 -1.442695, %v545_v0 }
 0x16a   : > { %1359 = vpow2.f32 %v1160_v50  ;;  %v1161_v56 = vmul.f32 -1.442695, %v546_v51  ;;  %v278_v50 = vld [vmem:[#allocation3] sm:$0xff] }
 0x16b   : > { %1361 = vpow2.f32 %v1162_v53  ;;  %v1163_v59 = vmul.f32 -1.442695, %v547_v54  ;;  %v1165_v37 = vmul.f32 -1.442695, %v549_v7  ;;  %v279_v53 = vld [vmem:[#allocation3 + $0x8] sm:$0xff] }
 0x16c   : > { %1363 = vpow2.f32 %v1161_v56 }
 0x16d   : > { %1365 = vpow2.f32 %v1163_v59 }
 0x16e   : > { %1367 = vtanh.f32 %v544_v31 }
 0x16f   : > { %1369 = vtanh.f32 %v548_v32 }
 0x170   : > { %1371 = vpow2.f32 %v1164_v35 }
 0x171   : > { %1373 = vpow2.f32 %v1165_v37 }
 0x174   : > { %v1360_v38 = vpop.eup %1359 }
 0x175   : > { %v1362_v39 = vpop.eup %1361  ;;  %v556_v40 = vadd.f32 1.0, %v1360_v38 }
 0x176   : > { %v1364_v41 = vpop.eup %1363  ;;  %v568_v42 = vadd.f32 1.0, %v1362_v39 }
 0x177   : > { %v1366_v43 = vpop.eup %1365  ;;  %1375 = vrcp.f32 %v556_v40  ;;  %v557_v44 = vadd.f32 1.0, %v1364_v41 }
 0x178   : > { %1377 = vrcp.f32 %v568_v42  ;;  %v569_v45 = vadd.f32 1.0, %v1366_v43  ;;  %v1368_v46 = vpop.eup %1367 }
 0x179   : > { %1379 = vrcp.f32 %v557_v44  ;;  %v1370_v47 = vpop.eup %1369 }
 0x17a   : > { %1381 = vrcp.f32 %v569_v45  ;;  %v1372_v48 = vpop.eup %1371 }
 0x17b   : > { %v1374_v49 = vpop.eup %1373  ;;  %v582_v55 = vadd.f32 1.0, %v1372_v48 }
 0x17c   : > { %v583_v60 = vadd.f32 1.0, %v1374_v49 }
 0x17d   : > { %1383 = vrcp.f32 %v582_v55 }
 0x181   : > { %v1376_v51 = vpop.eup %1375 }
 0x182   : > { %v1378_v52 = vpop.eup %1377  ;;  %v590_v54 = vmul.f32 %v1376_v51, %v1368_v46 }
 0x183   : > { %v1380_v56 = vpop.eup %1379  ;;  %v588_v57 = vmul.f32 %v1378_v52, %v278_v50 }
 0x184   : > { %v1382_v58 = vpop.eup %1381  ;;  %v591_v59 = vmul.f32 %v1380_v56, %v1370_v47 }
 0x185   : > { %v589_v61 = vmul.f32 %v1382_v58, %v279_v53  ;;  %v1964_v62 = vadd.f32 %v590_v54, %v588_v57 }
 0x187   : > { %1385 = vtanh.f32 %v1964_v62  ;;  %v1967_v63 = vadd.f32 %v591_v59, %v589_v61  ;;  %v1384_v0 = vpop.eup %1383 }
 0x188   : > { %1387 = vrcp.f32 %v583_v60 }
 0x189   : > { %1389 = vtanh.f32 %v1967_v63 }
 0x191   : > { %v1386_v1 = vpop.eup %1385 }
 0x192   : > { %v1388_v7 = vpop.eup %1387  ;;  %v596_v32 = vmul.f32 %v1386_v1, %v1384_v0 }
 0x193   : > { %v1390_v31 = vpop.eup %1389 }
 0x194   : > { %v597_v35 = vmul.f32 %v1390_v31, %v1388_v7 }
 0x196   : > { %v613_v37 = vpack.c.bf16 %v597_v35, %v596_v32 }
 0x198   : > { %647 = vmatmul.mubr.bf16.vlgmr.msra.gmra.mrb[4].mxu0 %v613_v37  ;;  %690 = vmatmul.mubr.bf16.vlgmr.msra.gmra.mrb[4].mxu1 %v613_v37 }
 0x199   : > { %773 = vmatpush1.bf16.msra.mxu0 %v1828_v2  ;;  %816 = vmatpush1.bf16.msra.mxu1 %v1843_v8  ;;  %v1166_v2 = vld [vmem:[%s1814_s23 + $0x20] sm:$0xff] }
 0x19a   : > { %774 = vmatprep.subr.bf16.mxu0 %v1833_v4  ;;  %817 = vmatprep.subr.bf16.mxu1 %v1853_v11  ;;  %v605_v4 = vunpack.c.l.bf16 %v1166_v2 }
 0x19b   : > { %804 = vmatprep.mubr.bf16.mxu0 %v1627_v3  ;;  %847 = vmatprep.mubr.bf16.mxu1 %v1627_v3  ;;  %v1168_v3 = vld [vmem:[%s1814_s23 + $0x30] sm:$0xff] }
 0x19d   : > { %775 = vmatpush1.bf16.msra.mxu0 %v1836_v5  ;;  %818 = vmatpush1.bf16.msra.mxu1 %v1855_v12  ;;  %v606_v5 = vunpack.c.h.bf16 %v1166_v2  ;;  %v1167_v12 = vld [vmem:[%s1814_s23 + $0x28] sm:$0xff] }
 0x19e   : > { %776 = vmatprep.subr.bf16.mxu0 %v1839_v6  ;;  %819 = vmatprep.subr.bf16.mxu1 %v1863_v15  ;;  %v609_v6 = vunpack.c.l.bf16 %v1168_v3 }
 0x1a1   : > { %777 = vmatpush1.bf16.msra.mxu0 %v1846_v9  ;;  %820 = vmatpush1.bf16.msra.mxu1 %v1867_v16 }
 0x1a2   : > { %778 = vmatprep.subr.bf16.mxu0 %v1850_v10  ;;  %821 = vmatprep.subr.bf16.mxu1 %v1870_v17  ;;  %v610_v10 = vunpack.c.h.bf16 %v1168_v3 }
 0x1a5   : > { %779 = vmatpush1.bf16.msra.mxu0 %v1859_v13  ;;  %822 = vmatpush1.bf16.msra.mxu1 %v1879_v20 }
 0x1a6   : > { %780 = vmatprep.subr.bf16.mxu0 %v1861_v14  ;;  %823 = vmatprep.subr.bf16.mxu1 %v1882_v21 }
 0x1a9   : > { %781 = vmatpush1.bf16.msra.mxu0 %v1873_v18  ;;  %824 = vmatpush1.bf16.msra.mxu1 %v1891_v24 }
 0x1aa   : > { %782 = vmatprep.subr.bf16.mxu0 %v1876_v19  ;;  %825 = vmatprep.subr.bf16.mxu1 %v1894_v25 }
 0x1ad   : > { %783 = vmatpush1.bf16.msra.mxu0 %v1885_v22  ;;  %826 = vmatpush1.bf16.msra.mxu1 %v1903_v28  ;;  %v607_v28 = vunpack.c.l.bf16 %v1167_v12 }
 0x1ae   : > { %784 = vmatprep.subr.bf16.mxu0 %v1888_v23  ;;  %827 = vmatprep.subr.bf16.mxu1 %v1906_v29  ;;  %v608_v23 = vunpack.c.h.bf16 %v1167_v12 }
 0x1b1   : > { %785 = vmatpush1.bf16.msra.mxu0 %v1897_v26  ;;  %828 = vmatpush1.bf16.msra.mxu1 %v1913_v33  ;;  %v1169_v26 = vld [vmem:[%s1814_s23 + $0x38] sm:$0xff] }
 0x1b2   : > { %786 = vmatprep.subr.bf16.mxu0 %v1900_v27  ;;  %829 = vmatprep.subr.bf16.mxu1 %v1916_v34  ;;  %v611_v33 = vunpack.c.l.bf16 %v1169_v26 }
 0x1b5   : > { %787 = vmatpush1.bf16.msra.mxu0 %v1909_v30  ;;  %830 = vmatpush1.bf16.msra.mxu1 %v1920_v36  ;;  %v612_v30 = vunpack.c.h.bf16 %v1169_v26 }
 0x26b   : > { %v648_v8 = vpop.f32.mrb[4].mxu0  ;;  %v691_v9 = vpop.f32.mrb[4].mxu1 }
 0x26c   : > { %v700_v11 = vadd.f32 %v648_v8, %v605_v4  ;;  %v650_v13 = vpop.f32.mrb[5].mxu0  ;;  %v693_v14 = vpop.f32.mrb[5].mxu1  ;;  %v702_v34 = vadd.f32 %v691_v9, %v607_v28  ;;  %v1178_v4 = vld [vmem:[%s1814_s23 + $0x50] sm:$0xff] }
 0x26d   : > { %v701_v15 = vadd.f32 %v650_v13, %v606_v5  ;;  %v652_v16 = vpop.f32.mrb[6].mxu0  ;;  %v695_v17 = vpop.f32.mrb[6].mxu1  ;;  %v703_v29 = vadd.f32 %v693_v14, %v608_v23  ;;  %v767_v8 = vunpack.c.l.bf16 %v1178_v4  ;;  %v1177_v13 = vld [vmem:[%s1814_s23 + $0x48] sm:$0xff] }
 0x26e   : > { %v1170_v18 = vmul.f32 -1.442695, %v700_v11  ;;  %v704_v19 = vadd.f32 %v652_v16, %v609_v6  ;;  %v654_v20 = vpop.f32.mrb[7].mxu0  ;;  %v697_v21 = vpop.f32.mrb[7].mxu1  ;;  %v706_v39 = vadd.f32 %v695_v17, %v611_v33  ;;  %v768_v11 = vunpack.c.h.bf16 %v1178_v4  ;;  %v1455_v4 = vld [vmem:[#allocation9] sm:$0xff] (!%p1186_p10)  }
 0x26f   : > { %v1172_v22 = vmul.f32 -1.442695, %v701_v15  ;;  %v705_v24 = vadd.f32 %v654_v20, %v610_v10  ;;  %v1174_v36 = vmul.f32 -1.442695, %v703_v29  ;;  %v707_v38 = vadd.f32 %v697_v21, %v612_v30 }
 0x270   : > { %1391 = vpow2.f32 %v1170_v18  ;;  %v1171_v25 = vmul.f32 -1.442695, %v704_v19  ;;  %v765_v29 = vunpack.c.l.bf16 %v1177_v13 }
 0x271   : > { %1393 = vpow2.f32 %v1172_v22  ;;  %v1173_v27 = vmul.f32 -1.442695, %v705_v24  ;;  %v1175_v43 = vmul.f32 -1.442695, %v707_v38  ;;  %v766_v24 = vunpack.c.h.bf16 %v1177_v13 }
 0x272   : > { %1395 = vpow2.f32 %v1171_v25 }
 0x273   : > { %1397 = vpow2.f32 %v1173_v27  ;;  %v1179_v27 = vld [vmem:[%s1814_s23 + $0x58] sm:$0xff] }
 0x274   : > { %1399 = vtanh.f32 %v702_v34  ;;  %v770_v33 = vunpack.c.h.bf16 %v1179_v27  ;;  %v769_v34 = vunpack.c.l.bf16 %v1179_v27 }
 0x275   : > { %1401 = vpow2.f32 %v1174_v36 }
 0x276   : > { %1403 = vtanh.f32 %v706_v39 }
 0x27a   : > { %v1392_v40 = vpop.eup %1391 }
 0x27b   : > { %v1394_v41 = vpop.eup %1393  ;;  %v714_v42 = vadd.f32 1.0, %v1392_v40 }
 0x27c   : > { %v726_v44 = vadd.f32 1.0, %v1394_v41  ;;  %v1396_v45 = vpop.eup %1395 }
 0x27d   : > { %1405 = vrcp.f32 %v714_v42  ;;  %v715_v46 = vadd.f32 1.0, %v1396_v45  ;;  %v1398_v47 = vpop.eup %1397 }
 0x27e   : > { %1407 = vrcp.f32 %v726_v44  ;;  %v727_v48 = vadd.f32 1.0, %v1398_v47  ;;  %v1400_v49 = vpop.eup %1399 }
 0x27f   : > { %1409 = vpow2.f32 %v1175_v43  ;;  %v1402_v50 = vpop.eup %1401 }
 0x280   : > { %1411 = vrcp.f32 %v715_v46  ;;  %v1404_v51 = vpop.eup %1403  ;;  %v740_v58 = vadd.f32 1.0, %v1402_v50 }
 0x281   : > { %1413 = vrcp.f32 %v727_v48 }
 0x282   : > { %1415 = vrcp.f32 %v740_v58 }
 0x287   : > { %v1406_v52 = vpop.eup %1405 }
 0x288   : > { %v1408_v53 = vpop.eup %1407  ;;  %v748_v54 = vmul.f32 %v1406_v52, %v1400_v49 }
 0x289   : > { %v1410_v55 = vpop.eup %1409  ;;  %v746_v56 = vmul.f32 %v1408_v53, %v1964_v62 }
 0x28a   : > { %v1412_v57 = vpop.eup %1411  ;;  %v741_v0 = vadd.f32 1.0, %v1410_v55 }
 0x28b   : > { %v2007_v59 = vadd.f32 %v748_v54, %v746_v56  ;;  %v749_v60 = vmul.f32 %v1412_v57, %v1404_v51  ;;  %v1414_v61 = vpop.eup %1413 }
 0x28c   : > { %v747_v1 = vmul.f32 %v1414_v61, %v1967_v63  ;;  %v1416_v62 = vpop.eup %1415  ;;  %v1176_v63 = vld [vmem:[%s1814_s23 + $0x40] sm:$0xff] }
 0x28d   : > { %1417 = vtanh.f32 %v2007_v59  ;;  %v763_v5 = vunpack.c.l.bf16 %v1176_v63  ;;  %v764_v6 = vunpack.c.h.bf16 %v1176_v63 }
 0x28e   : > { %v2011_v7 = vadd.f32 %v749_v60, %v747_v1  ;;  %1419 = vrcp.f32 %v741_v0 }
 0x290   : > { %1421 = vtanh.f32 %v2011_v7 }
 0x297   : > { %v1418_v31 = vpop.eup %1417 }
 0x298   : > { %v1420_v32 = vpop.eup %1419  ;;  %v754_v37 = vmul.f32 %v1418_v31, %v1416_v62 }
 0x29a   : > { %v1422_v35 = vpop.eup %1421 }
 0x29b   : > { %v755_v2 = vmul.f32 %v1422_v35, %v1420_v32 }
 0x29d   : > { %v771_v3 = vpack.c.bf16 %v755_v2, %v754_v37 }
 0x29f   : > { %805 = vmatmul.mubr.bf16.vlgmr.msra.gmra.mrb[8].mxu0 %v771_v3  ;;  %848 = vmatmul.mubr.bf16.vlgmr.msra.gmra.mrb[8].mxu1 %v771_v3 }
 0x372   : > { %v806_v9 = vpop.f32.mrb[8].mxu0  ;;  %v849_v10 = vpop.f32.mrb[8].mxu1 }
 0x373   : > { %v858_v12 = vadd.f32 %v806_v9, %v763_v5  ;;  %v808_v14 = vpop.f32.mrb[9].mxu0  ;;  %v851_v15 = vpop.f32.mrb[9].mxu1  ;;  %v860_v36 = vadd.f32 %v849_v10, %v765_v29  ;;  %v1628_v5 = vmov (!%p1186_p10), 0.0   ;;  %v1459_v9 = vld [vmem:[#allocation9 + $0x20] sm:$0xff] (!%p1186_p10)   ;;  %v1460_v10 = vld [vmem:[#allocation9 + $0x28] sm:$0xff] (!%p1186_p10)  }
 0x374   : > { %v859_v16 = vadd.f32 %v808_v14, %v764_v6  ;;  %v810_v17 = vpop.f32.mrb[10].mxu0  ;;  %v853_v18 = vpop.f32.mrb[10].mxu1  ;;  %v861_v30 = vadd.f32 %v851_v15, %v766_v24  ;;  %1212 = vmatprep.subr.bf16.mxu0 (!%p1186_p10), %v1628_v5  ;;  %1228 = vmatprep.mubr.msk.bf16.mxu0 (!%p1186_p10), %vm1629_vm0, %v1628_v5  ;;  %v1457_v6 = vld [vmem:[#allocation9 + $0x10] sm:$0xff] (!%p1186_p10)   ;;  %v1187_v14 = vld [vmem:[%s2063_s3] ss:$0 sm:$0xff] (!%p1186_p10) }
 0x375   : > { %v1180_v19 = vmul.f32 -1.442695, %v858_v12  ;;  %v862_v20 = vadd.f32 %v810_v17, %v767_v8  ;;  %v812_v21 = vpop.f32.mrb[11].mxu0  ;;  %v855_v22 = vpop.f32.mrb[11].mxu1  ;;  %v864_v40 = vadd.f32 %v853_v18, %v769_v34  ;;  %1213 = vmatpush3.bf16.msra.mxu0 (!%p1186_p10), %v1455_v4  ;;  %v1458_v8 = vld [vmem:[#allocation9 + $0x18] sm:$0xff] (!%p1186_p10)  }
 0x376   : > { %v1182_v23 = vmul.f32 -1.442695, %v859_v16  ;;  %v863_v25 = vadd.f32 %v812_v21, %v768_v11  ;;  %v1184_v38 = vmul.f32 -1.442695, %v861_v30  ;;  %v865_v39 = vadd.f32 %v855_v22, %v770_v33  ;;  %1214 = vmatprep.subr.bf16.mxu0 (!%p1186_p10), %v1628_v5  ;;  %v1461_v11 = vld [vmem:[#allocation9 + $0x30] sm:$0xff] (!%p1186_p10)   ;;  %v1462_v12 = vld [vmem:[#allocation9 + $0x38] sm:$0xff] (!%p1186_p10)  }
 0x377   : > { %1423 = vpow2.f32 %v1180_v19  ;;  %v1181_v26 = vmul.f32 -1.442695, %v862_v20 }
 0x378   : > { %1425 = vpow2.f32 %v1182_v23  ;;  %v1183_v28 = vmul.f32 -1.442695, %v863_v25  ;;  %v1185_v44 = vmul.f32 -1.442695, %v865_v39 }
 0x379   : > { %1427 = vpow2.f32 %v1181_v26 }
 0x37a   : > { %1429 = vpow2.f32 %v1183_v28 }
 0x37b   : > { %1431 = vtanh.f32 %v860_v36 }
 0x37c   : > { %1433 = vpow2.f32 %v1184_v38 }
 0x37d   : > { %1435 = vtanh.f32 %v864_v40 }
 0x381   : > { %v1424_v41 = vpop.eup %1423 }
 0x382   : > { %v1426_v42 = vpop.eup %1425  ;;  %v872_v43 = vadd.f32 1.0, %v1424_v41 }
 0x383   : > { %v884_v45 = vadd.f32 1.0, %v1426_v42  ;;  %v1428_v46 = vpop.eup %1427 }
 0x384   : > { %1437 = vrcp.f32 %v872_v43  ;;  %v873_v47 = vadd.f32 1.0, %v1428_v46  ;;  %v1430_v48 = vpop.eup %1429 }
 0x385   : > { %1439 = vrcp.f32 %v884_v45  ;;  %v885_v49 = vadd.f32 1.0, %v1430_v48  ;;  %v1432_v50 = vpop.eup %1431 }
 0x386   : > { %1441 = vpow2.f32 %v1185_v44  ;;  %v1434_v51 = vpop.eup %1433 }
 0x387   : > { %1443 = vrcp.f32 %v873_v47  ;;  %v1436_v52 = vpop.eup %1435  ;;  %v898_v56 = vadd.f32 1.0, %v1434_v51 }
 0x388   : > { %1445 = vrcp.f32 %v885_v49 }
 0x389   : > { %1447 = vrcp.f32 %v898_v56 }
 0x38e   : > { %v1438_v53 = vpop.eup %1437 }
 0x38f   : > { %v1440_v54 = vpop.eup %1439  ;;  %v906_v55 = vmul.f32 %v1438_v53, %v1432_v50 }
 0x390   : > { %v1442_v57 = vpop.eup %1441  ;;  %v904_v58 = vmul.f32 %v1440_v54, %v2007_v59 }
 0x391   : > { %v1444_v60 = vpop.eup %1443  ;;  %v899_v62 = vadd.f32 1.0, %v1442_v57 }
 0x392   : > { %v908_v61 = vadd.f32 %v906_v55, %v904_v58  ;;  %v907_v0 = vmul.f32 %v1444_v60, %v1436_v52  ;;  %v1446_v1 = vpop.eup %1445 }
 0x393   : > { %v905_v31 = vmul.f32 %v1446_v1, %v2011_v7  ;;  %v1448_v35 = vpop.eup %1447  ;;  %v1456_v7 = vld [vmem:[#allocation9 + $0x8] sm:$0xff] (!%p1186_p10)  }
 0x394   : > { %1449 = vtanh.f32 %v908_v61  ;;  %916 = vst [vmem:[#allocation3] sm:$0xff] %v908_v61  ;;  %1215 = vmatpush3.bf16.msra.mxu0 (!%p1186_p10), %v1456_v7 }
 0x395   : > { %v909_v32 = vadd.f32 %v907_v0, %v905_v31  ;;  %1451 = vrcp.f32 %v899_v62  ;;  %1216 = vmatprep.subr.bf16.mxu0 (!%p1186_p10), %v1628_v5 }
 0x397   : > { %1453 = vtanh.f32 %v909_v32  ;;  %917 = vst [vmem:[#allocation3 + $0x8] sm:$0xff] %v909_v32 }
 0x398   : > { %1217 = vmatpush3.bf16.msra.mxu0 (!%p1186_p10), %v1457_v6 }
 0x399   : > { %1218 = vmatprep.subr.bf16.mxu0 (!%p1186_p10), %v1628_v5 }
 0x39c   : > { %1219 = vmatpush3.bf16.msra.mxu0 (!%p1186_p10), %v1458_v8 }
 0x39d   : > { %1220 = vmatprep.subr.bf16.mxu0 (!%p1186_p10), %v1628_v5 }
 0x39e   : > { %v1450_v37 = vpop.eup %1449  ;;  %921 = sbr.rel (%p1186_p10) target bundleno = 1160 (0x488), region = 56 }
 0x39f   : > { %v912_v2 = vmul.f32 %v1450_v37, %v1448_v35  ;;  %v1452_v3 = vpop.eup %1451 }
 0x3a0   : > { %1221 = vmatpush3.bf16.msra.mxu0 (!%p1186_p10), %v1459_v9 }
 0x3a1   : > { %914 = vst [vmem:[#allocation2] sm:$0xff] %v912_v2  ;;  %v1454_v59 = vpop.eup %1453  ;;  %1222 = vmatprep.subr.bf16.mxu0 (!%p1186_p10), %v1628_v5 }
 0x3a2   : > { %v913_v63 = vmul.f32 %v1454_v59, %v1452_v3 }
 0x3a4   : > { %915 = vst [vmem:[#allocation2 + $0x8] sm:$0xff] %v913_v63  ;;  %1223 = vmatpush3.bf16.msra.mxu0 (!%p1186_p10), %v1460_v10  ;;  %v922_v13 = vpack.c.bf16 (!%p1186_p10), %v913_v63, %v912_v2 }
 0x3a5   : > { %1224 = vmatprep.subr.bf16.mxu0 %v1628_v5 }
 0x3a8   : > { %1225 = vmatpush3.bf16.msra.mxu0 %v1461_v11 }
 0x3a9   : > { %1226 = vmatprep.subr.bf16.mxu0 %v1628_v5 }
 0x3ac   : > { %1227 = vmatpush3.bf16.msra.mxu0 %v1462_v12 }
 0x3af   : > { %1229 = vmatmul.mubr.bf16.vlgmr.msra.gmra.mrb[0].mxu0 %v922_v13 }
 0x482   : > { %v1028_v15 = vpop.f32.mrb[0].mxu0 }
 0x483   : > { %v1029_v16 = vadd.f32 %v1187_v14, %v1028_v15  ;;  %v1230_v17 = vpop.f32.mrb[1].mxu0 }
 0x484   : > { %v1031_v18 = vpop.f32.mrb[2].mxu0 }
 0x485   : > { %1035 = vst [vmem:[#allocation10] sm:$0xff] %v1029_v16  ;;  %v1032_v19 = vadd.f32 %v1187_v14, %v1031_v18  ;;  %v1231_v20 = vpop.f32.mrb[3].mxu0 }
 0x487   : > { %1036 = vst [vmem:[#allocation10 + $0x8] sm:$0xff] %v1032_v19 }
 0x488 PF: > { %p1264_p1 = scmp.eq.s32.totalorder %s1677_s19, 2  ;;  %s1630_s9 = smov [#allocation10]  }
 0x489   : > { %s1043_s10 = sshll.u32 %s1630_s9, 4  ;;  %s1044_s10 = int_to_ptr.vmem [resolvable:$true] %s1043_s10 }
 0x48a   : > { %s1549_s24 = scalar_lea.vmem %s1044_s10, 256  ;;  %p1556_p8 = scmp.lt.s32.totalorder %s1044_s10, %s1044_s10 }
 0x48b   : > { %p1550_p4 = scmp.ne.s32.totalorder %s1044_s10, %s1549_s24  ;;  %p1557_p12 = scmp.lt.s32.totalorder %s1549_s24, %s1549_s24 }
 0x48d   : > { %p1551_p5 = pnand %p1550_p4, %p1264_p1  ;;  %p1558_p0 = por %p1557_p12, %p1556_p8 }
 0x48f   : > { %p1552_p6 = pneg %p1551_p5 }
 0x491   : > { %p1559_p2 = pnand %p1558_p0, %p1552_p6 }
 0x493   : > { %1562 = shalt.err (!%p1559_p2)
}
 0x494   : > { %s1563_s18 = scalar_lea.hbm %s2064_s4, 256 }
 0x495   : > { %p1564_p11 = scmp.ne.s32.totalorder %s2064_s4, %s1563_s18  ;;  %p1569_p9 = scmp.lt.u32.totalorder %s1563_s18, %s2064_s4 }
 0x497   : > { %p1565_p13 = pnand %p1564_p11, %p1264_p1 }
 0x499   : > { %p1566_p3 = pneg %p1565_p13 }
 0x49b   : > { %p1571_p7 = pnand %p1569_p9, %p1566_p3 }
 0x49d   : > { %1574 = shalt.err (!%p1571_p7)
}
 0x49e   : > { %s1631_s8 = smov 128   ;;  %s1632_s11 = smov 8  }
 0x49f   : > { %1245 = dma.vmem_to_hbm [thread:$0]  (%p1264_p1), %s1044_s10, 256, %s2064_s4, [#allocation6], %s1631_s8, %s1631_s8, %s1632_s11  }
 0x4a0   : > { %1600 = dma.done.wait (%p1264_p1), [#allocation6], 256  }
 0x4a1   : > { %1602 = vsyncadd (%p1264_p1), [#allocation6], 4294967040 }
 0x4a2 PF: > { %p16_p10 = scmp.ge.s32.totalorder %s1755_s7, 5   ;;  %s2077_s15 = smov %s1609_s16 }
 0x4a3   : > { %s2078_s16 = smov %s1613_s17  ;;  %s2079_s17 = smov %s1764_s12 }
 0x4a4   : > { %s2080_s18 = smov %s1755_s7  ;;  %18 = sbr.rel (!%p16_p10) target bundleno = 5 (0x5), region = 92 }
 0x4ab   :  { %1059 = vsyncpa [#allocation5], 1 }
 0x4ac   :  { %1061 = vsyncpa [#allocation5 + $0x1], 1 }
 0x4ad   :  { %1062 = vsyncpa [#allocation8], 1 }
 0x4ae   :  { %1063 = vsyncpa [#allocation6], 1 }
 0x4af   :  { %1065 = vsyncpa [#allocation6 + $0x1], 1 }

</bundles_post_ra>
